<compile_context>
chip_gen: v6e
topology: v6e:2x2x1
jax: 0.10.0
libtpu: 0.0.40
codegen_flags: <defaults>
</compile_context>

<pallas_src>
import jax
import jax.numpy as jnp
from jax import lax
from jax.experimental import pallas as pl
from jax.experimental.pallas import tpu as pltpu


def _bilstm_fused_kernel(x_ref, wxp_ref, whbd_ref, b_ref, out_ref, xz_ref):
    """Fused forward+backward LSTM recurrence.

    x_ref   : (T*Bp, 2I)  bf16  time-major rows; row t*Bp+b = [x[t,b] | x[T-1-t,b]]
    wxp_ref : (2I, 8H)    bf16  block-structured input->gate weights, gate-major
    whbd_ref: (2H, 8H)    bf16  block-diagonal hidden->gate weights, gate-major
    b_ref   : (1, 8H)     f32   gate bias, gate-major
    out_ref : (T, Bp, P)  f32   packed per-step outputs [h_cat | c_cat | f_cat | pad]
    xz_ref  : (T*Bp, 8H)  f32   VMEM scratch: hoisted input projection (+bias)
    """
    T, Bp, P = out_ref.shape
    H2 = whbd_ref.shape[0]           # 2H  (fwd|bwd concatenated state width)
    pad = P - 3 * H2

    # ---- phase 1: hoisted input projection for ALL steps & BOTH directions --
    # One big MXU matmul; the backward half is already time-aligned because the
    # wrapper packed x[T-1-t] into the second feature half of row t.
    xz_ref[...] = (jnp.dot(x_ref[...], wxp_ref[...],
                           preferred_element_type=jnp.float32)
                   + b_ref[...])                                  # (T*Bp, 8H) f32

    wh = whbd_ref[...]                                            # bf16, reused每step

    # ---- phase 2: serial recurrence, one fused h_cat @ Wh_bd per step -------
    h = jnp.zeros((Bp, H2), jnp.float32)
    c = jnp.zeros((Bp, H2), jnp.float32)
    zero_pad = jnp.zeros((Bp, pad), jnp.float32) if pad else None

    for t in range(T):               # T small & static -> full unroll
        # static row slice: zero runtime address generation
        z = xz_ref[t * Bp:(t + 1) * Bp, :] + jnp.dot(
            h.astype(jnp.bfloat16), wh, preferred_element_type=jnp.float32)

        # full-vreg sigmoid once, tanh only where needed; contiguous 2H slices
        sg = jax.nn.sigmoid(z)
        i_g = sg[:, 0 * H2:1 * H2]
        f_g = sg[:, 1 * H2:2 * H2]
        g_g = jnp.tanh(z[:, 2 * H2:3 * H2])
        o_g = sg[:, 3 * H2:4 * H2]

        c = f_g * c + i_g * g_g
        h = o_g * jnp.tanh(c)

        pieces = [h, c, f_g] + ([zero_pad] if pad else [])
        out_ref[t] = jnp.concatenate(pieces, axis=-1)   # lane-dense full vst


def _interleave_gates(a_fwd, a_bwd, H):
    """(..., 4H)+(..., 4H) -> (..., 8H) gate-major: [i_f i_b f_f f_b g_f g_b o_f o_b]."""
    parts = []
    for g in range(4):
        parts.append(a_fwd[..., g * H:(g + 1) * H])
        parts.append(a_bwd[..., g * H:(g + 1) * H])
    return jnp.concatenate(parts, axis=-1)


def bidirectional_lstm(x, params_fwd, params_bwd):
    """x: (B, T, input_size) float32 (torch batch-major convention).

    Returns the 7-tuple of the PyTorch module:
      (out, cs_forward, fs_forward, cs_backward, fs_backward,
       hidden_att_forward, hidden_att_backward)
    """
    B, T, I = x.shape
    wx_f, wh_f, b_f = params_fwd
    wx_b, wh_b, b_b = params_bwd
    H = wh_f.shape[0]
    H2 = 2 * H                                   # concatenated state width
    G2 = 8 * H                                   # fused gate width
    P = max(128, -(-3 * H2 // 128) * 128)        # packed output width (lane dense)
    Bp = -(-B // 8) * 8                          # pad batch to the sublane count

    # ---- wrapper-side layout prep (one-time, cheap XLA ops) -----------------
    # time-major, batch-padded; feature axis holds [x[t] | x[T-1-t]] so the
    # kernel's backward projection is already time-aligned.
    x_tm = jnp.transpose(x, (1, 0, 2))                            # (T, B, I)
    x_pair = jnp.concatenate([x_tm, x_tm[::-1]], axis=-1)         # (T, B, 2I)
    if Bp != B:
        x_pair = jnp.pad(x_pair, ((0, 0), (0, Bp - B), (0, 0)))
    x_pair = x_pair.reshape(T * Bp, 2 * I).astype(jnp.bfloat16)

    zeros4h = jnp.zeros_like(wx_f)
    wx_pair = jnp.concatenate([
        _interleave_gates(wx_f, jnp.zeros_like(wx_b), H),         # rows for x[t]
        _interleave_gates(jnp.zeros_like(wx_f), wx_b, H),         # rows for x[T-1-t]
    ], axis=0).astype(jnp.bfloat16)                               # (2I, 8H)
    del zeros4h

    wh_bd = jnp.concatenate([
        _interleave_gates(wh_f, jnp.zeros_like(wh_b), H),         # rows for h_fwd
        _interleave_gates(jnp.zeros_like(wh_f), wh_b, H),         # rows for h_bwd
    ], axis=0).astype(jnp.bfloat16)                               # (2H, 8H)

    b_cat = _interleave_gates(b_f, b_b, H).astype(jnp.float32)    # (1, 8H)

    packed = pl.pallas_call(
        _bilstm_fused_kernel,
        out_shape=jax.ShapeDtypeStruct((T, Bp, P), jnp.float32),
        grid_spec=pltpu.PrefetchScalarGridSpec(
            num_scalar_prefetch=0,
            grid=(1,),
            in_specs=[
                pl.BlockSpec((T * Bp, 2 * I), lambda i: (0, 0)),
                pl.BlockSpec((2 * I, G2), lambda i: (0, 0)),
                pl.BlockSpec((H2, G2), lambda i: (0, 0)),
                pl.BlockSpec((1, G2), lambda i: (0, 0)),
            ],
            out_specs=pl.BlockSpec((T, Bp, P), lambda i: (0, 0, 0)),
            scratch_shapes=[pltpu.VMEM((T * Bp, G2), jnp.float32)],
        ),
        compiler_params=pltpu.CompilerParams(
            dimension_semantics=("arbitrary",)),
    )(x_pair, wx_pair, wh_bd, b_cat)

    # ---- unpack: (T, Bp, P) -> (B, T, .), drop batch padding ----------------
    packed = jnp.transpose(packed[:, :B, :], (1, 0, 2))           # (B, T, P)
    hid_f = packed[..., 0 * H:1 * H]
    hid_b = packed[..., 1 * H:2 * H]
    cs_f = packed[..., 2 * H:3 * H]
    cs_b = packed[..., 3 * H:4 * H]
    fs_f = packed[..., 4 * H:5 * H]
    fs_b = packed[..., 5 * H:6 * H]

    hidden_att_backward = jnp.flip(hid_b, axis=1)                 # torch.flip(hid_b, [1])
    out = jnp.concatenate([hid_f, hidden_att_backward], axis=2)
    out = out[:, -1:, :]                                          # (B, 1, 2H)
    return (out, cs_f, fs_f, cs_b, fs_b, hid_f, hidden_att_backward)


def init_lstm_params(key, input_size, hidden_size):
    """Deterministic uniform(-1/sqrt(H), 1/sqrt(H)) init (PyTorch-style)."""
    k1, k2, k3 = jax.random.split(key, 3)
    bound = 1.0 / jnp.sqrt(jnp.float32(hidden_size))
    wx = jax.random.uniform(k1, (input_size, 4 * hidden_size),
                            jnp.float32, -bound, bound)
    wh = jax.random.uniform(k2, (hidden_size, 4 * hidden_size),
                            jnp.float32, -bound, bound)
    b = jax.random.uniform(k3, (1, 4 * hidden_size),
                           jnp.float32, -bound, bound)
    return wx, wh, b


# --------------------------- pure-JAX reference ------------------------------
def _lstm_ref(x_bm, wx, wh, b):
    B, T, _ = x_bm.shape
    H = wh.shape[0]

    def step(carry, x_t):
        h, c = carry
        z = x_t @ wx + h @ wh + b[0]
        i = jax.nn.sigmoid(z[:, 0 * H:1 * H])
        f = jax.nn.sigmoid(z[:, 1 * H:2 * H])
        g = jnp.tanh(z[:, 2 * H:3 * H])
        o = jax.nn.sigmoid(z[:, 3 * H:4 * H])
        c = f * c + i * g
        h = o * jnp.tanh(c)
        return (h, c), (h, c, f)

    x_tm = jnp.transpose(x_bm, (1, 0, 2))
    init = (jnp.zeros((B, H), jnp.float32), jnp.zeros((B, H), jnp.float32))
    _, (hs, cs, fs) = lax.scan(step, init, x_tm)
    to_bm = lambda a: jnp.transpose(a, (1, 0, 2))
    return to_bm(hs), to_bm(cs), to_bm(fs)


def bidirectional_lstm_ref(x, params_fwd, params_bwd):
    hf, cf, ff = _lstm_ref(x, *params_fwd)
    hb, cb, fb = _lstm_ref(jnp.flip(x, axis=1), *params_bwd)
    hb_flipped = jnp.flip(hb, axis=1)
    out = jnp.concatenate([hf, hb_flipped], axis=2)[:, -1:, :]
    return out, cf, ff, cb, fb, hf, hb_flipped


if __name__ == "__main__":
    batch_size = 2
    seq_len = 8
    input_size = 4
    hidden_size = 32

    key = jax.random.PRNGKey(0)
    kx, kf, kb = jax.random.split(key, 3)
    x = jax.random.normal(kx, (batch_size, seq_len, input_size), jnp.float32)

    params_fwd = init_lstm_params(kf, input_size, hidden_size)
    params_bwd = init_lstm_params(kb, input_size, hidden_size)

    run = jax.jit(bidirectional_lstm)
    outs = jax.block_until_ready(run(x, params_fwd, params_bwd))

    (out, cs_f, fs_f, cs_b, fs_b, hid_f, hid_b) = outs
    assert out.shape == (batch_size, 1, 2 * hidden_size)
    assert hid_f.shape == (batch_size, seq_len, hidden_size)
    assert hid_b.shape == (batch_size, seq_len, hidden_size)
    assert cs_f.shape == fs_f.shape == cs_b.shape == fs_b.shape == hid_f.shape

    # numerical check vs pure-JAX reference (loose tol: bf16 MXU operands)
    refs = jax.block_until_ready(jax.jit(bidirectional_lstm_ref)(x, params_fwd, params_bwd))
    for got, want in zip(outs, refs):
        err = float(jnp.max(jnp.abs(got - want)))
        assert err < 5e-2, f"mismatch vs reference: max abs err {err}"

    print("KERNEL_OK")
</pallas_src>

<mosaic_0001>
module attributes {stable_mosaic.version = 11 : i64} {
  func.func @_bilstm_fused_kernel(%arg0: i32, %arg1: memref<64x8xbf16, #tpu.memory_space<vmem>>, %arg2: memref<8x256xbf16, #tpu.memory_space<vmem>>, %arg3: memref<64x256xbf16, #tpu.memory_space<vmem>>, %arg4: memref<1x256xf32, #tpu.memory_space<vmem>>, %arg5: memref<8x8x256xf32, #tpu.memory_space<vmem>>, %arg6: memref<64x256xf32, #tpu.memory_space<vmem>>) attributes {dimension_semantics = [#tpu.dimension_semantics<arbitrary>], iteration_bounds = array<i64: 1>, scalar_prefetch = 0 : i64, scratch_operands = 1 : i64, tpu.core_type = #tpu.core_type<tc>, window_params = [{pipeline_mode = #tpu.pipeline_mode<synchronous>, transform_indices = @transform_0, window_bounds = array<i64: 64, 8>}, {pipeline_mode = #tpu.pipeline_mode<synchronous>, transform_indices = @transform_1, window_bounds = array<i64: 8, 256>}, {pipeline_mode = #tpu.pipeline_mode<synchronous>, transform_indices = @transform_2, window_bounds = array<i64: 64, 256>}, {pipeline_mode = #tpu.pipeline_mode<synchronous>, transform_indices = @transform_3, window_bounds = array<i64: 1, 256>}, {pipeline_mode = #tpu.pipeline_mode<synchronous>, transform_indices = @transform_4, window_bounds = array<i64: 8, 8, 256>}]} {
    %c0 = arith.constant 0 : index
    %c0_0 = arith.constant 0 : index
    %0 = vector.load %arg1[%c0, %c0_0] : memref<64x8xbf16, #tpu.memory_space<vmem>>, vector<64x8xbf16>
    %c0_1 = arith.constant 0 : index
    %c0_2 = arith.constant 0 : index
    %1 = vector.load %arg2[%c0_1, %c0_2] : memref<8x256xbf16, #tpu.memory_space<vmem>>, vector<8x256xbf16>
    %cst = arith.constant dense<0.000000e+00> : vector<64x256xf32>
    %2 = tpu.matmul %0, %1, %cst {dimension_numbers = #tpu.dot_dimension_numbers<[1], [0], [0], [1], [0, 0, 1, 1], [], []>} : vector<64x8xbf16>, vector<8x256xbf16>, vector<64x256xf32> -> vector<64x256xf32>
    %c0_3 = arith.constant 0 : index
    %c0_4 = arith.constant 0 : index
    %3 = vector.load %arg4[%c0_3, %c0_4] : memref<1x256xf32, #tpu.memory_space<vmem>>, vector<1x256xf32>
    %4 = vector.broadcast %3 : vector<1x256xf32> to vector<64x256xf32>
    %5 = arith.addf %2, %4 : vector<64x256xf32>
    %c0_5 = arith.constant 0 : index
    %c0_6 = arith.constant 0 : index
    %6 = vector.load %arg6[%c0_5, %c0_6] : memref<64x256xf32, #tpu.memory_space<vmem>>, vector<64x256xf32>
    tpu.vector_store %arg6[%c0_5, %c0_6], %5 {strides = array<i32>} : memref<64x256xf32, #tpu.memory_space<vmem>>, vector<64x256xf32>,
    %c0_7 = arith.constant 0 : index
    %c0_8 = arith.constant 0 : index
    %7 = vector.load %arg3[%c0_7, %c0_8] : memref<64x256xbf16, #tpu.memory_space<vmem>>, vector<64x256xbf16>
    %cst_9 = arith.constant 0.000000e+00 : f32
    %8 = vector.broadcast %cst_9 : f32 to vector<8x64xf32>
    %cst_10 = arith.constant 0.000000e+00 : f32
    %9 = vector.broadcast %cst_10 : f32 to vector<8x64xf32>
    %cst_11 = arith.constant 0.000000e+00 : f32
    %10 = vector.broadcast %cst_11 : f32 to vector<8x64xf32>
    %c0_12 = arith.constant 0 : index
    %c0_13 = arith.constant 0 : index
    %11 = vector.load %arg6[%c0_12, %c0_13] : memref<64x256xf32, #tpu.memory_space<vmem>>, vector<8x256xf32>
    %12 = arith.truncf %8 : vector<8x64xf32> to vector<8x64xbf16>
    %cst_14 = arith.constant dense<0.000000e+00> : vector<8x256xf32>
    %13 = tpu.matmul %12, %7, %cst_14 {dimension_numbers = #tpu.dot_dimension_numbers<[1], [0], [0], [1], [0, 0, 1, 1], [], []>} : vector<8x64xbf16>, vector<64x256xbf16>, vector<8x256xf32> -> vector<8x256xf32>
    %14 = arith.addf %11, %13 : vector<8x256xf32>
    %15 = arith.negf %14 : vector<8x256xf32>
    %16 = math.exp %15 : vector<8x256xf32>
    %cst_15 = arith.constant 1.000000e+00 : f32
    %17 = vector.broadcast %cst_15 : f32 to vector<8x256xf32>
    %18 = arith.addf %17, %16 : vector<8x256xf32>
    %19 = arith.divf %17, %18 : vector<8x256xf32>
    %20 = vector.extract_strided_slice %19 {offsets = [0, 0], sizes = [8, 64], strides = [1, 1]} : vector<8x256xf32> to vector<8x64xf32>
    %21 = vector.extract_strided_slice %19 {offsets = [0, 64], sizes = [8, 64], strides = [1, 1]} : vector<8x256xf32> to vector<8x64xf32>
    %22 = vector.extract_strided_slice %14 {offsets = [0, 128], sizes = [8, 64], strides = [1, 1]} : vector<8x256xf32> to vector<8x64xf32>
    %23 = math.tanh %22 : vector<8x64xf32>
    %24 = vector.extract_strided_slice %19 {offsets = [0, 192], sizes = [8, 64], strides = [1, 1]} : vector<8x256xf32> to vector<8x64xf32>
    %25 = arith.mulf %21, %9 : vector<8x64xf32>
    %26 = arith.mulf %20, %23 : vector<8x64xf32>
    %27 = arith.addf %25, %26 : vector<8x64xf32>
    %28 = math.tanh %27 : vector<8x64xf32>
    %29 = arith.mulf %24, %28 : vector<8x64xf32>
    %30 = tpu.concatenate %29, %27, %21, %10 in 1 : vector<8x64xf32>, vector<8x64xf32>, vector<8x64xf32>, vector<8x64xf32> -> vector<8x256xf32>
    %c0_16 = arith.constant 0 : index
    %c0_17 = arith.constant 0 : index
    %c0_18 = arith.constant 0 : index
    %31 = vector.load %arg5[%c0_16, %c0_17, %c0_18] : memref<8x8x256xf32, #tpu.memory_space<vmem>>, vector<1x8x256xf32>
    %32 = vector.shape_cast %31 : vector<1x8x256xf32> to vector<8x256xf32>
    %33 = vector.shape_cast %30 : vector<8x256xf32> to vector<1x8x256xf32>
    tpu.vector_store %arg5[%c0_16, %c0_17, %c0_18], %33 {strides = array<i32>} : memref<8x8x256xf32, #tpu.memory_space<vmem>>, vector<1x8x256xf32>,
    %c8 = arith.constant 8 : index
    %c0_19 = arith.constant 0 : index
    %34 = vector.load %arg6[%c8, %c0_19] : memref<64x256xf32, #tpu.memory_space<vmem>>, vector<8x256xf32>
    %35 = arith.truncf %29 : vector<8x64xf32> to vector<8x64xbf16>
    %cst_20 = arith.constant dense<0.000000e+00> : vector<8x256xf32>
    %36 = tpu.matmul %35, %7, %cst_20 {dimension_numbers = #tpu.dot_dimension_numbers<[1], [0], [0], [1], [0, 0, 1, 1], [], []>} : vector<8x64xbf16>, vector<64x256xbf16>, vector<8x256xf32> -> vector<8x256xf32>
    %37 = arith.addf %34, %36 : vector<8x256xf32>
    %38 = arith.negf %37 : vector<8x256xf32>
    %39 = math.exp %38 : vector<8x256xf32>
    %cst_21 = arith.constant 1.000000e+00 : f32
    %40 = vector.broadcast %cst_21 : f32 to vector<8x256xf32>
    %41 = arith.addf %40, %39 : vector<8x256xf32>
    %42 = arith.divf %40, %41 : vector<8x256xf32>
    %43 = vector.extract_strided_slice %42 {offsets = [0, 0], sizes = [8, 64], strides = [1, 1]} : vector<8x256xf32> to vector<8x64xf32>
    %44 = vector.extract_strided_slice %42 {offsets = [0, 64], sizes = [8, 64], strides = [1, 1]} : vector<8x256xf32> to vector<8x64xf32>
    %45 = vector.extract_strided_slice %37 {offsets = [0, 128], sizes = [8, 64], strides = [1, 1]} : vector<8x256xf32> to vector<8x64xf32>
    %46 = math.tanh %45 : vector<8x64xf32>
    %47 = vector.extract_strided_slice %42 {offsets = [0, 192], sizes = [8, 64], strides = [1, 1]} : vector<8x256xf32> to vector<8x64xf32>
    %48 = arith.mulf %44, %27 : vector<8x64xf32>
    %49 = arith.mulf %43, %46 : vector<8x64xf32>
    %50 = arith.addf %48, %49 : vector<8x64xf32>
    %51 = math.tanh %50 : vector<8x64xf32>
    %52 = arith.mulf %47, %51 : vector<8x64xf32>
    %53 = tpu.concatenate %52, %50, %44, %10 in 1 : vector<8x64xf32>, vector<8x64xf32>, vector<8x64xf32>, vector<8x64xf32> -> vector<8x256xf32>
    %c1 = arith.constant 1 : index
    %c0_22 = arith.constant 0 : index
    %c0_23 = arith.constant 0 : index
    %54 = vector.load %arg5[%c1, %c0_22, %c0_23] : memref<8x8x256xf32, #tpu.memory_space<vmem>>, vector<1x8x256xf32>
    %55 = vector.shape_cast %54 : vector<1x8x256xf32> to vector<8x256xf32>
    %56 = vector.shape_cast %53 : vector<8x256xf32> to vector<1x8x256xf32>
    tpu.vector_store %arg5[%c1, %c0_22, %c0_23], %56 {strides = array<i32>} : memref<8x8x256xf32, #tpu.memory_space<vmem>>, vector<1x8x256xf32>,
    %c16 = arith.constant 16 : index
    %c0_24 = arith.constant 0 : index
    %57 = vector.load %arg6[%c16, %c0_24] : memref<64x256xf32, #tpu.memory_space<vmem>>, vector<8x256xf32>
    %58 = arith.truncf %52 : vector<8x64xf32> to vector<8x64xbf16>
    %cst_25 = arith.constant dense<0.000000e+00> : vector<8x256xf32>
    %59 = tpu.matmul %58, %7, %cst_25 {dimension_numbers = #tpu.dot_dimension_numbers<[1], [0], [0], [1], [0, 0, 1, 1], [], []>} : vector<8x64xbf16>, vector<64x256xbf16>, vector<8x256xf32> -> vector<8x256xf32>
    %60 = arith.addf %57, %59 : vector<8x256xf32>
    %61 = arith.negf %60 : vector<8x256xf32>
    %62 = math.exp %61 : vector<8x256xf32>
    %cst_26 = arith.constant 1.000000e+00 : f32
    %63 = vector.broadcast %cst_26 : f32 to vector<8x256xf32>
    %64 = arith.addf %63, %62 : vector<8x256xf32>
    %65 = arith.divf %63, %64 : vector<8x256xf32>
    %66 = vector.extract_strided_slice %65 {offsets = [0, 0], sizes = [8, 64], strides = [1, 1]} : vector<8x256xf32> to vector<8x64xf32>
    %67 = vector.extract_strided_slice %65 {offsets = [0, 64], sizes = [8, 64], strides = [1, 1]} : vector<8x256xf32> to vector<8x64xf32>
    %68 = vector.extract_strided_slice %60 {offsets = [0, 128], sizes = [8, 64], strides = [1, 1]} : vector<8x256xf32> to vector<8x64xf32>
    %69 = math.tanh %68 : vector<8x64xf32>
    %70 = vector.extract_strided_slice %65 {offsets = [0, 192], sizes = [8, 64], strides = [1, 1]} : vector<8x256xf32> to vector<8x64xf32>
    %71 = arith.mulf %67, %50 : vector<8x64xf32>
    %72 = arith.mulf %66, %69 : vector<8x64xf32>
    %73 = arith.addf %71, %72 : vector<8x64xf32>
    %74 = math.tanh %73 : vector<8x64xf32>
    %75 = arith.mulf %70, %74 : vector<8x64xf32>
    %76 = tpu.concatenate %75, %73, %67, %10 in 1 : vector<8x64xf32>, vector<8x64xf32>, vector<8x64xf32>, vector<8x64xf32> -> vector<8x256xf32>
    %c2 = arith.constant 2 : index
    %c0_27 = arith.constant 0 : index
    %c0_28 = arith.constant 0 : index
    %77 = vector.load %arg5[%c2, %c0_27, %c0_28] : memref<8x8x256xf32, #tpu.memory_space<vmem>>, vector<1x8x256xf32>
    %78 = vector.shape_cast %77 : vector<1x8x256xf32> to vector<8x256xf32>
    %79 = vector.shape_cast %76 : vector<8x256xf32> to vector<1x8x256xf32>
    tpu.vector_store %arg5[%c2, %c0_27, %c0_28], %79 {strides = array<i32>} : memref<8x8x256xf32, #tpu.memory_space<vmem>>, vector<1x8x256xf32>,
    %c24 = arith.constant 24 : index
    %c0_29 = arith.constant 0 : index
    %80 = vector.load %arg6[%c24, %c0_29] : memref<64x256xf32, #tpu.memory_space<vmem>>, vector<8x256xf32>
    %81 = arith.truncf %75 : vector<8x64xf32> to vector<8x64xbf16>
    %cst_30 = arith.constant dense<0.000000e+00> : vector<8x256xf32>
    %82 = tpu.matmul %81, %7, %cst_30 {dimension_numbers = #tpu.dot_dimension_numbers<[1], [0], [0], [1], [0, 0, 1, 1], [], []>} : vector<8x64xbf16>, vector<64x256xbf16>, vector<8x256xf32> -> vector<8x256xf32>
    %83 = arith.addf %80, %82 : vector<8x256xf32>
    %84 = arith.negf %83 : vector<8x256xf32>
    %85 = math.exp %84 : vector<8x256xf32>
    %cst_31 = arith.constant 1.000000e+00 : f32
    %86 = vector.broadcast %cst_31 : f32 to vector<8x256xf32>
    %87 = arith.addf %86, %85 : vector<8x256xf32>
    %88 = arith.divf %86, %87 : vector<8x256xf32>
    %89 = vector.extract_strided_slice %88 {offsets = [0, 0], sizes = [8, 64], strides = [1, 1]} : vector<8x256xf32> to vector<8x64xf32>
    %90 = vector.extract_strided_slice %88 {offsets = [0, 64], sizes = [8, 64], strides = [1, 1]} : vector<8x256xf32> to vector<8x64xf32>
    %91 = vector.extract_strided_slice %83 {offsets = [0, 128], sizes = [8, 64], strides = [1, 1]} : vector<8x256xf32> to vector<8x64xf32>
    %92 = math.tanh %91 : vector<8x64xf32>
    %93 = vector.extract_strided_slice %88 {offsets = [0, 192], sizes = [8, 64], strides = [1, 1]} : vector<8x256xf32> to vector<8x64xf32>
    %94 = arith.mulf %90, %73 : vector<8x64xf32>
    %95 = arith.mulf %89, %92 : vector<8x64xf32>
    %96 = arith.addf %94, %95 : vector<8x64xf32>
    %97 = math.tanh %96 : vector<8x64xf32>
    %98 = arith.mulf %93, %97 : vector<8x64xf32>
    %99 = tpu.concatenate %98, %96, %90, %10 in 1 : vector<8x64xf32>, vector<8x64xf32>, vector<8x64xf32>, vector<8x64xf32> -> vector<8x256xf32>
    %c3 = arith.constant 3 : index
    %c0_32 = arith.constant 0 : index
    %c0_33 = arith.constant 0 : index
    %100 = vector.load %arg5[%c3, %c0_32, %c0_33] : memref<8x8x256xf32, #tpu.memory_space<vmem>>, vector<1x8x256xf32>
    %101 = vector.shape_cast %100 : vector<1x8x256xf32> to vector<8x256xf32>
    %102 = vector.shape_cast %99 : vector<8x256xf32> to vector<1x8x256xf32>
    tpu.vector_store %arg5[%c3, %c0_32, %c0_33], %102 {strides = array<i32>} : memref<8x8x256xf32, #tpu.memory_space<vmem>>, vector<1x8x256xf32>,
    %c32 = arith.constant 32 : index
    %c0_34 = arith.constant 0 : index
    %103 = vector.load %arg6[%c32, %c0_34] : memref<64x256xf32, #tpu.memory_space<vmem>>, vector<8x256xf32>
    %104 = arith.truncf %98 : vector<8x64xf32> to vector<8x64xbf16>
    %cst_35 = arith.constant dense<0.000000e+00> : vector<8x256xf32>
    %105 = tpu.matmul %104, %7, %cst_35 {dimension_numbers = #tpu.dot_dimension_numbers<[1], [0], [0], [1], [0, 0, 1, 1], [], []>} : vector<8x64xbf16>, vector<64x256xbf16>, vector<8x256xf32> -> vector<8x256xf32>
    %106 = arith.addf %103, %105 : vector<8x256xf32>
    %107 = arith.negf %106 : vector<8x256xf32>
    %108 = math.exp %107 : vector<8x256xf32>
    %cst_36 = arith.constant 1.000000e+00 : f32
    %109 = vector.broadcast %cst_36 : f32 to vector<8x256xf32>
    %110 = arith.addf %109, %108 : vector<8x256xf32>
    %111 = arith.divf %109, %110 : vector<8x256xf32>
    %112 = vector.extract_strided_slice %111 {offsets = [0, 0], sizes = [8, 64], strides = [1, 1]} : vector<8x256xf32> to vector<8x64xf32>
    %113 = vector.extract_strided_slice %111 {offsets = [0, 64], sizes = [8, 64], strides = [1, 1]} : vector<8x256xf32> to vector<8x64xf32>
    %114 = vector.extract_strided_slice %106 {offsets = [0, 128], sizes = [8, 64], strides = [1, 1]} : vector<8x256xf32> to vector<8x64xf32>
    %115 = math.tanh %114 : vector<8x64xf32>
    %116 = vector.extract_strided_slice %111 {offsets = [0, 192], sizes = [8, 64], strides = [1, 1]} : vector<8x256xf32> to vector<8x64xf32>
    %117 = arith.mulf %113, %96 : vector<8x64xf32>
    %118 = arith.mulf %112, %115 : vector<8x64xf32>
    %119 = arith.addf %117, %118 : vector<8x64xf32>
    %120 = math.tanh %119 : vector<8x64xf32>
    %121 = arith.mulf %116, %120 : vector<8x64xf32>
    %122 = tpu.concatenate %121, %119, %113, %10 in 1 : vector<8x64xf32>, vector<8x64xf32>, vector<8x64xf32>, vector<8x64xf32> -> vector<8x256xf32>
    %c4 = arith.constant 4 : index
    %c0_37 = arith.constant 0 : index
    %c0_38 = arith.constant 0 : index
    %123 = vector.load %arg5[%c4, %c0_37, %c0_38] : memref<8x8x256xf32, #tpu.memory_space<vmem>>, vector<1x8x256xf32>
    %124 = vector.shape_cast %123 : vector<1x8x256xf32> to vector<8x256xf32>
    %125 = vector.shape_cast %122 : vector<8x256xf32> to vector<1x8x256xf32>
    tpu.vector_store %arg5[%c4, %c0_37, %c0_38], %125 {strides = array<i32>} : memref<8x8x256xf32, #tpu.memory_space<vmem>>, vector<1x8x256xf32>,
    %c40 = arith.constant 40 : index
    %c0_39 = arith.constant 0 : index
    %126 = vector.load %arg6[%c40, %c0_39] : memref<64x256xf32, #tpu.memory_space<vmem>>, vector<8x256xf32>
    %127 = arith.truncf %121 : vector<8x64xf32> to vector<8x64xbf16>
    %cst_40 = arith.constant dense<0.000000e+00> : vector<8x256xf32>
    %128 = tpu.matmul %127, %7, %cst_40 {dimension_numbers = #tpu.dot_dimension_numbers<[1], [0], [0], [1], [0, 0, 1, 1], [], []>} : vector<8x64xbf16>, vector<64x256xbf16>, vector<8x256xf32> -> vector<8x256xf32>
    %129 = arith.addf %126, %128 : vector<8x256xf32>
    %130 = arith.negf %129 : vector<8x256xf32>
    %131 = math.exp %130 : vector<8x256xf32>
    %cst_41 = arith.constant 1.000000e+00 : f32
    %132 = vector.broadcast %cst_41 : f32 to vector<8x256xf32>
    %133 = arith.addf %132, %131 : vector<8x256xf32>
    %134 = arith.divf %132, %133 : vector<8x256xf32>
    %135 = vector.extract_strided_slice %134 {offsets = [0, 0], sizes = [8, 64], strides = [1, 1]} : vector<8x256xf32> to vector<8x64xf32>
    %136 = vector.extract_strided_slice %134 {offsets = [0, 64], sizes = [8, 64], strides = [1, 1]} : vector<8x256xf32> to vector<8x64xf32>
    %137 = vector.extract_strided_slice %129 {offsets = [0, 128], sizes = [8, 64], strides = [1, 1]} : vector<8x256xf32> to vector<8x64xf32>
    %138 = math.tanh %137 : vector<8x64xf32>
    %139 = vector.extract_strided_slice %134 {offsets = [0, 192], sizes = [8, 64], strides = [1, 1]} : vector<8x256xf32> to vector<8x64xf32>
    %140 = arith.mulf %136, %119 : vector<8x64xf32>
    %141 = arith.mulf %135, %138 : vector<8x64xf32>
    %142 = arith.addf %140, %141 : vector<8x64xf32>
    %143 = math.tanh %142 : vector<8x64xf32>
    %144 = arith.mulf %139, %143 : vector<8x64xf32>
    %145 = tpu.concatenate %144, %142, %136, %10 in 1 : vector<8x64xf32>, vector<8x64xf32>, vector<8x64xf32>, vector<8x64xf32> -> vector<8x256xf32>
    %c5 = arith.constant 5 : index
    %c0_42 = arith.constant 0 : index
    %c0_43 = arith.constant 0 : index
    %146 = vector.load %arg5[%c5, %c0_42, %c0_43] : memref<8x8x256xf32, #tpu.memory_space<vmem>>, vector<1x8x256xf32>
    %147 = vector.shape_cast %146 : vector<1x8x256xf32> to vector<8x256xf32>
    %148 = vector.shape_cast %145 : vector<8x256xf32> to vector<1x8x256xf32>
    tpu.vector_store %arg5[%c5, %c0_42, %c0_43], %148 {strides = array<i32>} : memref<8x8x256xf32, #tpu.memory_space<vmem>>, vector<1x8x256xf32>,
    %c48 = arith.constant 48 : index
    %c0_44 = arith.constant 0 : index
    %149 = vector.load %arg6[%c48, %c0_44] : memref<64x256xf32, #tpu.memory_space<vmem>>, vector<8x256xf32>
    %150 = arith.truncf %144 : vector<8x64xf32> to vector<8x64xbf16>
    %cst_45 = arith.constant dense<0.000000e+00> : vector<8x256xf32>
    %151 = tpu.matmul %150, %7, %cst_45 {dimension_numbers = #tpu.dot_dimension_numbers<[1], [0], [0], [1], [0, 0, 1, 1], [], []>} : vector<8x64xbf16>, vector<64x256xbf16>, vector<8x256xf32> -> vector<8x256xf32>
    %152 = arith.addf %149, %151 : vector<8x256xf32>
    %153 = arith.negf %152 : vector<8x256xf32>
    %154 = math.exp %153 : vector<8x256xf32>
    %cst_46 = arith.constant 1.000000e+00 : f32
    %155 = vector.broadcast %cst_46 : f32 to vector<8x256xf32>
    %156 = arith.addf %155, %154 : vector<8x256xf32>
    %157 = arith.divf %155, %156 : vector<8x256xf32>
    %158 = vector.extract_strided_slice %157 {offsets = [0, 0], sizes = [8, 64], strides = [1, 1]} : vector<8x256xf32> to vector<8x64xf32>
    %159 = vector.extract_strided_slice %157 {offsets = [0, 64], sizes = [8, 64], strides = [1, 1]} : vector<8x256xf32> to vector<8x64xf32>
    %160 = vector.extract_strided_slice %152 {offsets = [0, 128], sizes = [8, 64], strides = [1, 1]} : vector<8x256xf32> to vector<8x64xf32>
    %161 = math.tanh %160 : vector<8x64xf32>
    %162 = vector.extract_strided_slice %157 {offsets = [0, 192], sizes = [8, 64], strides = [1, 1]} : vector<8x256xf32> to vector<8x64xf32>
    %163 = arith.mulf %159, %142 : vector<8x64xf32>
    %164 = arith.mulf %158, %161 : vector<8x64xf32>
    %165 = arith.addf %163, %164 : vector<8x64xf32>
    %166 = math.tanh %165 : vector<8x64xf32>
    %167 = arith.mulf %162, %166 : vector<8x64xf32>
    %168 = tpu.concatenate %167, %165, %159, %10 in 1 : vector<8x64xf32>, vector<8x64xf32>, vector<8x64xf32>, vector<8x64xf32> -> vector<8x256xf32>
    %c6 = arith.constant 6 : index
    %c0_47 = arith.constant 0 : index
    %c0_48 = arith.constant 0 : index
    %169 = vector.load %arg5[%c6, %c0_47, %c0_48] : memref<8x8x256xf32, #tpu.memory_space<vmem>>, vector<1x8x256xf32>
    %170 = vector.shape_cast %169 : vector<1x8x256xf32> to vector<8x256xf32>
    %171 = vector.shape_cast %168 : vector<8x256xf32> to vector<1x8x256xf32>
    tpu.vector_store %arg5[%c6, %c0_47, %c0_48], %171 {strides = array<i32>} : memref<8x8x256xf32, #tpu.memory_space<vmem>>, vector<1x8x256xf32>,
    %c56 = arith.constant 56 : index
    %c0_49 = arith.constant 0 : index
    %172 = vector.load %arg6[%c56, %c0_49] : memref<64x256xf32, #tpu.memory_space<vmem>>, vector<8x256xf32>
    %173 = arith.truncf %167 : vector<8x64xf32> to vector<8x64xbf16>
    %cst_50 = arith.constant dense<0.000000e+00> : vector<8x256xf32>
    %174 = tpu.matmul %173, %7, %cst_50 {dimension_numbers = #tpu.dot_dimension_numbers<[1], [0], [0], [1], [0, 0, 1, 1], [], []>} : vector<8x64xbf16>, vector<64x256xbf16>, vector<8x256xf32> -> vector<8x256xf32>
    %175 = arith.addf %172, %174 : vector<8x256xf32>
    %176 = arith.negf %175 : vector<8x256xf32>
    %177 = math.exp %176 : vector<8x256xf32>
    %cst_51 = arith.constant 1.000000e+00 : f32
    %178 = vector.broadcast %cst_51 : f32 to vector<8x256xf32>
    %179 = arith.addf %178, %177 : vector<8x256xf32>
    %180 = arith.divf %178, %179 : vector<8x256xf32>
    %181 = vector.extract_strided_slice %180 {offsets = [0, 0], sizes = [8, 64], strides = [1, 1]} : vector<8x256xf32> to vector<8x64xf32>
    %182 = vector.extract_strided_slice %180 {offsets = [0, 64], sizes = [8, 64], strides = [1, 1]} : vector<8x256xf32> to vector<8x64xf32>
    %183 = vector.extract_strided_slice %175 {offsets = [0, 128], sizes = [8, 64], strides = [1, 1]} : vector<8x256xf32> to vector<8x64xf32>
    %184 = math.tanh %183 : vector<8x64xf32>
    %185 = vector.extract_strided_slice %180 {offsets = [0, 192], sizes = [8, 64], strides = [1, 1]} : vector<8x256xf32> to vector<8x64xf32>
    %186 = arith.mulf %182, %165 : vector<8x64xf32>
    %187 = arith.mulf %181, %184 : vector<8x64xf32>
    %188 = arith.addf %186, %187 : vector<8x64xf32>
    %189 = math.tanh %188 : vector<8x64xf32>
    %190 = arith.mulf %185, %189 : vector<8x64xf32>
    %191 = tpu.concatenate %190, %188, %182, %10 in 1 : vector<8x64xf32>, vector<8x64xf32>, vector<8x64xf32>, vector<8x64xf32> -> vector<8x256xf32>
    %c7 = arith.constant 7 : index
    %c0_52 = arith.constant 0 : index
    %c0_53 = arith.constant 0 : index
    %192 = vector.load %arg5[%c7, %c0_52, %c0_53] : memref<8x8x256xf32, #tpu.memory_space<vmem>>, vector<1x8x256xf32>
    %193 = vector.shape_cast %192 : vector<1x8x256xf32> to vector<8x256xf32>
    %194 = vector.shape_cast %191 : vector<8x256xf32> to vector<1x8x256xf32>
    tpu.vector_store %arg5[%c7, %c0_52, %c0_53], %194 {strides = array<i32>} : memref<8x8x256xf32, #tpu.memory_space<vmem>>, vector<1x8x256xf32>,
    return
  }
  func.func @transform_0(%arg0: i32) -> (i32, i32) {
    %c0_i32 = arith.constant 0 : i32
    %c0_i32_0 = arith.constant 0 : i32
    %c0_i32_1 = arith.constant 0 : i32
    return %c0_i32, %c0_i32_0 : i32, i32
  }
  func.func @transform_1(%arg0: i32) -> (i32, i32) {
    %c0_i32 = arith.constant 0 : i32
    %c0_i32_0 = arith.constant 0 : i32
    %c0_i32_1 = arith.constant 0 : i32
    return %c0_i32, %c0_i32_0 : i32, i32
  }
  func.func @transform_2(%arg0: i32) -> (i32, i32) {
    %c0_i32 = arith.constant 0 : i32
    %c0_i32_0 = arith.constant 0 : i32
    %c0_i32_1 = arith.constant 0 : i32
    return %c0_i32, %c0_i32_0 : i32, i32
  }
  func.func @transform_3(%arg0: i32) -> (i32, i32) {
    %c0_i32 = arith.constant 0 : i32
    %c0_i32_0 = arith.constant 0 : i32
    %c0_i32_1 = arith.constant 0 : i32
    return %c0_i32, %c0_i32_0 : i32, i32
  }
  func.func @transform_4(%arg0: i32) -> (i32, i32, i32) {
    %c0_i32 = arith.constant 0 : i32
    %c0_i32_0 = arith.constant 0 : i32
    %c0_i32_1 = arith.constant 0 : i32
    %c0_i32_2 = arith.constant 0 : i32
    return %c0_i32, %c0_i32_0, %c0_i32_1 : i32, i32, i32
  }
}

</mosaic_0001>

<bundles_post_ra>
// kernel: bidirectional_lstm.1
= control target key start
LH: loop header
LB: loop body
LE: loop exit
PB: predicated region body
PF: predicated region fallthrough
CT: control target
= control target key end

     0   :  { %v1089_v1 = vmov 0   ;;  %vm77_vm0 = vcmask 1043456   ;;  %vm64_vm1 = vcmask 64512   ;;  %v29_v14 = vlaneseq  ;;  %s1496_s2 = inlined_call_operand.vmem [shape: bf16[64,256], index: 2, kind: input, shape index: {}]   ;;  %s1497_s1 = inlined_call_operand.vmem [shape: bf16[8,256], index: 1, kind: input, shape index: {}]   ;;  %s1498_s0 = inlined_call_operand.vmem [shape: bf16[64,8], index: 0, kind: input, shape index: {}]   ;;  %s1499_s3 = inlined_call_operand.vmem [shape: f32[1,256], index: 3, kind: input, shape index: {}]   ;;  %s1500_s4 = inlined_call_operand.vmem [shape: f32[8,8,256], index: 4, kind: output, shape index: {}]  }
   0x1   :  { %v1119_v0 = vld [vmem:[%s1496_s2 + $0x34] ss:$8 sps:$4 sm:$0xff]   ;;  %116 = vmatprep.mubr.bf16.mxu0 %v1089_v1  ;;  %259 = vmatprep.mubr.bf16.mxu1 %v1089_v1  ;;  %v1126_v2 = vld [vmem:[%s1496_s2 + $0x30] ss:$8 sps:$4 sm:$0xff]   ;;  %v26_v3 = vld [vmem:[%s1497_s1] sm:$0xff]  ;;  %vm223_vm2 = vcmask 523264  }
   0x2   :  { %235 = vmatprep.subr.bf16.mxu1 %v1119_v0  ;;  %v922_v4 = vcombine.high %v26_v3, %v26_v3  ;;  %v1135_v5 = vld [vmem:[%s1496_s2 + $0x24] ss:$8 sps:$4 sm:$0xff]   ;;  %v921_v6 = vcombine.low %v26_v3, %v26_v3  ;;  %v1140_v7 = vld [vmem:[%s1496_s2 + $0x20] ss:$8 sps:$4 sm:$0xff]   ;;  %v1150_v10 = vld [vmem:[%s1496_s2 + $0x14] ss:$8 sps:$4 sm:$0xff]  }
   0x3   :  { %236 = vmatpush1.bf16.msra.mxu1 %v1126_v2  ;;  %v983_v8 = vld [vmem:[%s1498_s0] sm:$0xff]   ;;  %v1155_v11 = vld [vmem:[%s1496_s2 + $0x10] ss:$8 sps:$4 sm:$0xff]   ;;  %v30_v15 = vshrl.u32 %v29_v14, 7  ;;  %v990_v3 = vld [vmem:[%s1498_s0 + $0x8] sm:$0xff]  }
   0x4   :  { %923 = vmatprep.subr.msk.bf16.mxu0 %vm77_vm0, %v922_v4  ;;  %237 = vmatprep.subr.bf16.mxu1 %v1135_v5  ;;  %v79_v9 = vsel %vm77_vm0, %v921_v6, 0  ;;  %v1160_v12 = vld [vmem:[%s1496_s2 + $0x4] ss:$8 sps:$4 sm:$0xff]   ;;  %v1173_v13 = vld [vmem:[%s1496_s2] ss:$8 sps:$4 sm:$0xff]   ;;  %v991_v4 = vld [vmem:[%s1498_s0 + $0x10] sm:$0xff]  }
   0x5   :  { %99 = vmatpush1.bf16.msra.mxu0 %v79_v9  ;;  %v31_v16 = vsub.s32 0, %v30_v15  ;;  %v27_v17 = vld [vmem:[%s1499_s3] sm:$0x3]  ;;  %v35_v26 = vsub.s32 1, %v30_v15  ;;  %s1090_s3 = smov 64   ;;  %v992_v6 = vld [vmem:[%s1498_s0 + $0x18] sm:$0xff]  }
   0x6   :  { %408 = vmatprep.subr.bf16.mxu0 %v1119_v0 }
   0x7   :  { %238 = vmatpush1.bf16.msra.mxu1 %v1140_v7  ;;  %v1197_v18 = vrot.slane %v27_v17, %v31_v16  ;;  %v1200_v28 = vrot.slane %v27_v17, %v35_v26 }
   0x8   :  { %924 = vmatmul.mubr.msk.bf16.vlgmr.msra.gmra.mxu0 %vm64_vm1, %v983_v8  ;;  %239 = vmatprep.subr.bf16.mxu1 %v1150_v10 }
   0x9   :  { %409 = vmatpush1.bf16.msra.mxu0 %v1126_v2  ;;  %126 = vmatprep.mubr.bf16.mxu0 %v1089_v1 }
   0xa   :  { %410 = vmatprep.subr.bf16.mxu0 %v1135_v5 }
   0xb   :  { %240 = vmatpush1.bf16.msra.mxu1 %v1155_v11 }
   0xc   :  { %241 = vmatprep.subr.bf16.mxu1 %v1160_v12 }
   0xd   :  { %411 = vmatpush1.bf16.msra.mxu0 %v1140_v7 }
   0xe   :  { %412 = vmatprep.subr.bf16.mxu0 %v1150_v10 }
   0xf   :  { %242 = vmatpush1.bf16.msra.mxu1 %v1173_v13 }
  0x10   :  { %321 = vmatprep.subr.bf16.mxu1 %v1119_v0  ;;  %925 = vmatmul.mubr.msk.bf16.gmra.mxu0 %vm64_vm1, %v990_v3 }
  0x11   :  { %413 = vmatpush1.bf16.msra.mxu0 %v1155_v11  ;;  %136 = vmatprep.mubr.bf16.mxu0 %v1089_v1 }
  0x12   :  { %260 = vmatmul.mubr.bf16.vlgmr.msra.gmra.mxu1 %v1089_v1  ;;  %414 = vmatprep.subr.bf16.mxu0 %v1160_v12 }
  0x13   :  { %322 = vmatpush1.bf16.msra.mxu1 %v1126_v2  ;;  %345 = vmatprep.mubr.bf16.mxu1 %v1089_v1 }
  0x14   :  { %323 = vmatprep.subr.bf16.mxu1 %v1135_v5 }
  0x15   :  { %415 = vmatpush1.bf16.msra.mxu0 %v1173_v13 }
  0x16   :  { %582 = vmatprep.subr.bf16.mxu0 %v1119_v0 }
  0x17   :  { %324 = vmatpush1.bf16.msra.mxu1 %v1140_v7 }
  0x18   :  { %325 = vmatprep.subr.bf16.mxu1 %v1150_v10  ;;  %926 = vmatmul.mubr.msk.bf16.gmra.mxu0 %vm64_vm1, %v991_v4 }
  0x19   :  { %146 = vmatprep.mubr.bf16.mxu0 %v1089_v1 }
  0x1b   :  { %326 = vmatpush1.bf16.msra.mxu1 %v1155_v11 }
  0x1c   :  { %327 = vmatprep.subr.bf16.mxu1 %v1160_v12 }
  0x1f   :  { %328 = vmatpush1.bf16.msra.mxu1 %v1173_v13 }
  0x20   :  { %495 = vmatprep.subr.bf16.mxu1 %v1119_v0  ;;  %927 = vmatmul.mubr.msk.bf16.gmra.mxu0 %vm64_vm1, %v992_v6 }
  0x21   :  { %432 = vmatprep.mubr.bf16.mxu0 %v1089_v1 }
  0xc8   :  { %v118_v19 = vpop.f32.mrf.mxu0 }
  0xc9   :  { %v119_v20 = vadd.f32 %v118_v19, %v1197_v18 }
  0xca   :  { %v120_v29 = vpop.f32.mrf.mxu0 }
  0xcb   :  { %v121_v30 = vadd.f32 %v120_v29, %v1200_v28 }
  0xcc   :  { %v122_v48 = vpop.f32.mrf.mxu0 }
  0xcd   :  { %v123_v49 = vadd.f32 %v122_v48, %v1197_v18 }
  0xce   :  { %v124_v56 = vpop.f32.mrf.mxu0 }
  0xcf   :  { %v125_v57 = vadd.f32 %v124_v56, %v1200_v28 }
  0xd2   :  { %v261_v21 = vpop.f32.mrf.mxu1 }
  0xd3   :  { %v268_v22 = vadd.f32 %v261_v21, %v119_v20 }
  0xd4   :  { %v263_v23 = vpop.f32.mrf.mxu1 }
  0xd5   :  { %v936_v24 = vmul.f32 -1.442695, %v268_v22  ;;  %v269_v31 = vadd.f32 %v263_v23, %v121_v30 }
  0xd6   :  { %v265_v25 = vpop.f32.mrf.mxu1 }
  0xd7   :  { %993 = vpow2.f32 %v936_v24  ;;  %v937_v37 = vmul.f32 -1.442695, %v269_v31  ;;  %v128_v24 = vpop.f32.mrf.mxu0 }
  0xd8   :  { %v266_v27 = vpop.f32.mrf.mxu1  ;;  %995 = vtanh.f32 %v269_v31 }
  0xd9   :  { %v130_v25 = vpop.f32.mrf.mxu0 }
  0xdb   :  { %v132_v26 = vpop.f32.mrf.mxu0 }
  0xdc   :  { %v133_v6 = vadd.f32 %v132_v26, %v1197_v18 }
  0xdd   :  { %v134_v27 = vpop.f32.mrf.mxu0 }
  0xdf   :  { %v1267_v29 = vpop.f32.mrf.mxu0 }
  0xe1   :  { %v1269_v30 = vpop.f32.mrf.mxu0 }
  0xe3   :  { %v1271_v31 = vpop.f32.mrf.mxu0 }
  0xe4   :  { %v994_v32 = vpop.eup %993 }
  0xe5   :  { %v276_v33 = vadd.f32 1.0, %v994_v32  ;;  %v996_v34 = vpop.eup %995  ;;  %v1273_v32 = vpop.f32.mrf.mxu0 }
  0xe7   :  { %997 = vrcp.f32 %v276_v33  ;;  %v1275_v33 = vpop.f32.mrf.mxu0 }
  0xe8   :  { %999 = vpow2.f32 %v937_v37 }
  0xf4   :  { %v1203_v35 = vpop.eup %997 }
  0xf5   :  { %v284_v36 = vmul.f32 %v1203_v35, %v996_v34  ;;  %v1000_v38 = vpop.eup %999  ;;  %v283_v40 = vmul.f32 0.0, %v1203_v35  ;;  %v1277_v34 = vpop.f32.mrf.mxu0 }
  0xf6   :  { %v277_v39 = vadd.f32 1.0, %v1000_v38  ;;  %v129_v38 = vadd.f32 %v128_v24, %v1197_v18 }
  0xf7   :  { %286 = vrot.lane.b32.xlu0 %v284_v36, %s1090_s3  ;;  %v1279_v36 = vpop.f32.mrf.mxu0 }
  0xf8   :  { %1001 = vrcp.f32 %v277_v39 }
  0xf9   :  { %v1281_v37 = vpop.f32.mrf.mxu0 }
 0x105   :  { %v1002_v43 = vpop.eup %1001 }
 0x169   :  { %v287_v41 = vpop.permute.xlu0 %286 }
 0x16a   :  { %v1208_v42 = vadd.f32 %v287_v41, %v283_v40 }
 0x16c   :  { %1003 = vtanh.f32 %v1208_v42 }
 0x179   :  { %v1004_v44 = vpop.eup %1003 }
 0x17a   :  { %v1211_v45 = vmul.f32 %v1004_v44, %v1002_v43 }
 0x17c   :  { %v306_v46 = vpack.c.bf16 %v1211_v45, %v1211_v45 }
 0x17e   :  { %308 = vrot.lane.b32.xlu0 %v306_v46, %s1090_s3 }
 0x1f0   :  { %v309_v47 = vpop.permute.xlu0 %308 }
 0x1f1   :  { %938 = vmatmul.mubr.msk.bf16.vlgmr.msra.gmra.mxu1 %vm223_vm2, %v309_v47  ;;  %v131_v47 = vadd.f32 %v130_v25, %v1200_v28 }
 0x1f2   :  { %496 = vmatpush1.bf16.msra.mxu1 %v1126_v2  ;;  %519 = vmatprep.mubr.bf16.mxu1 %v1089_v1 }
 0x1f3   :  { %497 = vmatprep.subr.bf16.mxu1 %v1135_v5 }
 0x1f6   :  { %498 = vmatpush1.bf16.msra.mxu1 %v1140_v7 }
 0x1f7   :  { %499 = vmatprep.subr.bf16.mxu1 %v1150_v10 }
 0x1fa   :  { %500 = vmatpush1.bf16.msra.mxu1 %v1155_v11 }
 0x1fb   :  { %501 = vmatprep.subr.bf16.mxu1 %v1160_v12 }
 0x1fe   :  { %502 = vmatpush1.bf16.msra.mxu1 %v1173_v13 }
 0x1ff   :  { %669 = vmatprep.subr.bf16.mxu1 %v1119_v0 }
 0x2b1   :  { %v347_v50 = vpop.f32.mrf.mxu1 }
 0x2b2   :  { %v354_v51 = vadd.f32 %v347_v50, %v123_v49 }
 0x2b3   :  { %v349_v52 = vpop.f32.mrf.mxu1 }
 0x2b4   :  { %v939_v53 = vmul.f32 -1.442695, %v354_v51  ;;  %v355_v58 = vadd.f32 %v349_v52, %v125_v57 }
 0x2b5   :  { %v351_v54 = vpop.f32.mrf.mxu1 }
 0x2b6   :  { %1005 = vpow2.f32 %v939_v53  ;;  %v940_v8 = vmul.f32 -1.442695, %v355_v58 }
 0x2b7   :  { %v352_v55 = vpop.f32.mrf.mxu1  ;;  %1007 = vtanh.f32 %v355_v58 }
 0x2c3   :  { %v1006_v59 = vpop.eup %1005 }
 0x2c4   :  { %v362_v60 = vadd.f32 1.0, %v1006_v59  ;;  %v1008_v61 = vpop.eup %1007 }
 0x2c6   :  { %1009 = vrcp.f32 %v362_v60 }
 0x2c7   :  { %1011 = vpow2.f32 %v940_v8 }
 0x2d3   :  { %v1228_v62 = vpop.eup %1009 }
 0x2d4   :  { %v370_v63 = vmul.f32 %v1228_v62, %v1008_v61  ;;  %v1012_v9 = vpop.eup %1011  ;;  %v369_v15 = vmul.f32 %v1228_v62, %v1208_v42 }
 0x2d5   :  { %v363_v14 = vadd.f32 1.0, %v1012_v9 }
 0x2d6   :  { %372 = vrot.lane.b32.xlu1 %v370_v63, %s1090_s3 }
 0x2d7   :  { %1013 = vrcp.f32 %v363_v14 }
 0x2e4   :  { %v1014_v19 = vpop.eup %1013 }
 0x348   :  { %v373_v16 = vpop.permute.xlu1 %372 }
 0x349   :  { %v1249_v17 = vadd.f32 %v373_v16, %v369_v15 }
 0x34b   :  { %1015 = vtanh.f32 %v1249_v17 }
 0x358   :  { %v1016_v20 = vpop.eup %1015 }
 0x359   :  { %v1252_v21 = vmul.f32 %v1016_v20, %v1014_v19  ;;  %v135_v20 = vadd.f32 %v134_v27, %v1200_v28 }
 0x35b   :  { %v393_v22 = vpack.c.bf16 %v1252_v21, %v1252_v21 }
 0x35d   :  { %395 = vrot.lane.b32.xlu1 %v393_v22, %s1090_s3 }
 0x3cf   :  { %v396_v23 = vpop.permute.xlu1 %395 }
 0x3d0   :  { %943 = vmatmul.mubr.msk.bf16.vlgmr.msra.gmra.mxu0 %vm223_vm2, %v396_v23 }
 0x3d1   :  { %583 = vmatpush1.bf16.msra.mxu0 %v1126_v2  ;;  %606 = vmatprep.mubr.bf16.mxu0 %v1089_v1 }
 0x3d2   :  { %584 = vmatprep.subr.bf16.mxu0 %v1135_v5 }
 0x3d5   :  { %585 = vmatpush1.bf16.msra.mxu0 %v1140_v7 }
 0x3d6   :  { %586 = vmatprep.subr.bf16.mxu0 %v1150_v10 }
 0x3d9   :  { %587 = vmatpush1.bf16.msra.mxu0 %v1155_v11 }
 0x3da   :  { %588 = vmatprep.subr.bf16.mxu0 %v1160_v12 }
 0x3dd   :  { %589 = vmatpush1.bf16.msra.mxu0 %v1173_v13 }
 0x3de   :  { %756 = vmatprep.subr.bf16.mxu0 %v1119_v0 }
 0x490   :  { %v434_v39 = vpop.f32.mrf.mxu0 }
 0x491   :  { %v441_v40 = vadd.f32 %v434_v39, %v129_v38 }
 0x492   :  { %v436_v41 = vpop.f32.mrf.mxu0 }
 0x493   :  { %v944_v43 = vmul.f32 -1.442695, %v441_v40  ;;  %v442_v48 = vadd.f32 %v436_v41, %v131_v47 }
 0x494   :  { %v438_v44 = vpop.f32.mrf.mxu0 }
 0x495   :  { %1017 = vpow2.f32 %v944_v43  ;;  %v945_v54 = vmul.f32 -1.442695, %v442_v48 }
 0x496   :  { %v439_v46 = vpop.f32.mrf.mxu0  ;;  %1019 = vtanh.f32 %v442_v48 }
 0x4a2   :  { %v1018_v49 = vpop.eup %1017 }
 0x4a3   :  { %v449_v50 = vadd.f32 1.0, %v1018_v49  ;;  %v1020_v51 = vpop.eup %1019 }
 0x4a5   :  { %1021 = vrcp.f32 %v449_v50  ;;  %v139_v50 = vadd.f32 %v1267_v29, %v1197_v18 }
 0x4a6   :  { %1023 = vpow2.f32 %v945_v54 }
 0x4b2   :  { %v1285_v52 = vpop.eup %1021 }
 0x4b3   :  { %v457_v53 = vmul.f32 %v1285_v52, %v1020_v51  ;;  %v1024_v55 = vpop.eup %1023  ;;  %v456_v57 = vmul.f32 %v1285_v52, %v1249_v17 }
 0x4b4   :  { %v450_v56 = vadd.f32 1.0, %v1024_v55 }
 0x4b5   :  { %459 = vrot.lane.b32.xlu0 %v457_v53, %s1090_s3 }
 0x4b6   :  { %1025 = vrcp.f32 %v450_v56 }
 0x4c3   :  { %v1026_v60 = vpop.eup %1025 }
 0x527   :  { %v460_v58 = vpop.permute.xlu0 %459 }
 0x528   :  { %v1291_v59 = vadd.f32 %v460_v58, %v456_v57  ;;  %v141_v58 = vadd.f32 %v1269_v30, %v1200_v28 }
 0x52a   :  { %1027 = vtanh.f32 %v1291_v59 }
 0x537   :  { %v1028_v61 = vpop.eup %1027 }
 0x538   :  { %v1294_v63 = vmul.f32 %v1028_v61, %v1026_v60 }
 0x53a   :  { %v480_v3 = vpack.c.bf16 %v1294_v63, %v1294_v63 }
 0x53c   :  { %482 = vrot.lane.b32.xlu1 %v480_v3, %s1090_s3 }
 0x5ae   :  { %v483_v4 = vpop.permute.xlu1 %482 }
 0x5af   :  { %948 = vmatmul.mubr.msk.bf16.vlgmr.msra.gmra.mxu1 %vm223_vm2, %v483_v4 }
 0x5b0   :  { %670 = vmatpush1.bf16.msra.mxu1 %v1126_v2  ;;  %693 = vmatprep.mubr.bf16.mxu1 %v1089_v1 }
 0x5b1   :  { %671 = vmatprep.subr.bf16.mxu1 %v1135_v5 }
 0x5b4   :  { %672 = vmatpush1.bf16.msra.mxu1 %v1140_v7 }
 0x5b5   :  { %673 = vmatprep.subr.bf16.mxu1 %v1150_v10 }
 0x5b8   :  { %674 = vmatpush1.bf16.msra.mxu1 %v1155_v11 }
 0x5b9   :  { %675 = vmatprep.subr.bf16.mxu1 %v1160_v12 }
 0x5bc   :  { %676 = vmatpush1.bf16.msra.mxu1 %v1173_v13 }
 0x5bd   :  { %843 = vmatprep.subr.bf16.mxu1 %v1119_v0 }
 0x66f   :  { %v521_v8 = vpop.f32.mrf.mxu1 }
 0x670   :  { %v528_v9 = vadd.f32 %v521_v8, %v133_v6 }
 0x671   :  { %v523_v14 = vpop.f32.mrf.mxu1 }
 0x672   :  { %v949_v15 = vmul.f32 -1.442695, %v528_v9  ;;  %v529_v22 = vadd.f32 %v523_v14, %v135_v20 }
 0x673   :  { %v525_v16 = vpop.f32.mrf.mxu1 }
 0x674   :  { %1029 = vpow2.f32 %v949_v15  ;;  %v950_v26 = vmul.f32 -1.442695, %v529_v22 }
 0x675   :  { %v526_v19 = vpop.f32.mrf.mxu1  ;;  %1031 = vtanh.f32 %v529_v22 }
 0x681   :  { %v1030_v23 = vpop.eup %1029 }
 0x682   :  { %v536_v24 = vadd.f32 1.0, %v1030_v23  ;;  %v1032_v25 = vpop.eup %1031 }
 0x684   :  { %1033 = vrcp.f32 %v536_v24 }
 0x685   :  { %1035 = vpow2.f32 %v950_v26 }
 0x691   :  { %v1311_v38 = vpop.eup %1033 }
 0x692   :  { %v544_v0 = vmul.f32 %v1311_v38, %v1032_v25  ;;  %v1036_v39 = vpop.eup %1035  ;;  %v543_v41 = vmul.f32 %v1311_v38, %v1291_v59  ;;  %v143_v25 = vadd.f32 %v1271_v31, %v1197_v18 }
 0x693   :  { %v537_v40 = vadd.f32 1.0, %v1036_v39 }
 0x694   :  { %546 = vrot.lane.b32.xlu0 %v544_v0, %s1090_s3 }
 0x695   :  { %1037 = vrcp.f32 %v537_v40 }
 0x6a2   :  { %v1038_v44 = vpop.eup %1037 }
 0x706   :  { %v547_v27 = vpop.permute.xlu0 %546 }
 0x707   :  { %v1317_v43 = vadd.f32 %v547_v27, %v543_v41 }
 0x709   :  { %1039 = vtanh.f32 %v1317_v43 }
 0x716   :  { %v1040_v46 = vpop.eup %1039 }
 0x717   :  { %v1320_v47 = vmul.f32 %v1040_v46, %v1038_v44 }
 0x719   :  { %v567_v48 = vpack.c.bf16 %v1320_v47, %v1320_v47 }
 0x71b   :  { %569 = vrot.lane.b32.xlu1 %v567_v48, %s1090_s3 }
 0x78d   :  { %v570_v49 = vpop.permute.xlu1 %569 }
 0x78e   :  { %953 = vmatmul.mubr.msk.bf16.vlgmr.msra.gmra.mxu0 %vm223_vm2, %v570_v49 }
 0x78f   :  { %757 = vmatpush1.bf16.msra.mxu0 %v1126_v2  ;;  %780 = vmatprep.mubr.bf16.mxu0 %v1089_v1 }
 0x790   :  { %758 = vmatprep.subr.bf16.mxu0 %v1135_v5 }
 0x793   :  { %759 = vmatpush1.bf16.msra.mxu0 %v1140_v7 }
 0x794   :  { %760 = vmatprep.subr.bf16.mxu0 %v1150_v10 }
 0x797   :  { %761 = vmatpush1.bf16.msra.mxu0 %v1155_v11 }
 0x798   :  { %762 = vmatprep.subr.bf16.mxu0 %v1160_v12 }
 0x79b   :  { %763 = vmatpush1.bf16.msra.mxu0 %v1173_v13 }
 0x84e   :  { %v608_v51 = vpop.f32.mrf.mxu0 }
 0x84f   :  { %v615_v53 = vadd.f32 %v608_v51, %v139_v50 }
 0x850   :  { %v610_v54 = vpop.f32.mrf.mxu0 }
 0x851   :  { %v954_v55 = vmul.f32 -1.442695, %v615_v53  ;;  %v616_v60 = vadd.f32 %v610_v54, %v141_v58 }
 0x852   :  { %v612_v56 = vpop.f32.mrf.mxu0 }
 0x853   :  { %1041 = vpow2.f32 %v954_v55  ;;  %v955_v8 = vmul.f32 -1.442695, %v616_v60  ;;  %v149_v55 = vadd.f32 %v1275_v33, %v1197_v18 }
 0x854   :  { %v613_v57 = vpop.f32.mrf.mxu0  ;;  %1043 = vtanh.f32 %v616_v60 }
 0x860   :  { %v1042_v61 = vpop.eup %1041 }
 0x861   :  { %v623_v3 = vadd.f32 1.0, %v1042_v61  ;;  %v1044_v4 = vpop.eup %1043 }
 0x863   :  { %1045 = vrcp.f32 %v623_v3 }
 0x864   :  { %1047 = vpow2.f32 %v955_v8 }
 0x870   :  { %v1338_v6 = vpop.eup %1045 }
 0x871   :  { %v631_v29 = vmul.f32 %v1338_v6, %v1044_v4  ;;  %v1048_v9 = vpop.eup %1047  ;;  %v630_v15 = vmul.f32 %v1338_v6, %v1317_v43  ;;  %v151_v4 = vadd.f32 %v1277_v34, %v1200_v28 }
 0x872   :  { %v624_v14 = vadd.f32 1.0, %v1048_v9 }
 0x873   :  { %633 = vrot.lane.b32.xlu0 %v631_v29, %s1090_s3 }
 0x874   :  { %1049 = vrcp.f32 %v624_v14 }
 0x881   :  { %v1050_v19 = vpop.eup %1049 }
 0x8e5   :  { %v634_v30 = vpop.permute.xlu0 %633 }
 0x8e6   :  { %v1344_v16 = vadd.f32 %v634_v30, %v630_v15 }
 0x8e8   :  { %1051 = vtanh.f32 %v1344_v16 }
 0x8f5   :  { %v1052_v20 = vpop.eup %1051 }
 0x8f6   :  { %v1347_v22 = vmul.f32 %v1052_v20, %v1050_v19 }
 0x8f8   :  { %v654_v23 = vpack.c.bf16 %v1347_v22, %v1347_v22 }
 0x8fa   :  { %656 = vrot.lane.b32.xlu1 %v654_v23, %s1090_s3 }
 0x96c   :  { %v657_v24 = vpop.permute.xlu1 %656 }
 0x96d   :  { %958 = vmatmul.mubr.msk.bf16.vlgmr.msra.gmra.mxu1 %vm223_vm2, %v657_v24 }
 0x96e   :  { %844 = vmatpush1.bf16.msra.mxu1 %v1126_v2  ;;  %867 = vmatprep.mubr.bf16.mxu1 %v1089_v1 }
 0x96f   :  { %845 = vmatprep.subr.bf16.mxu1 %v1135_v5 }
 0x972   :  { %846 = vmatpush1.bf16.msra.mxu1 %v1140_v7  ;;  %v145_v7 = vadd.f32 %v1273_v32, %v1200_v28 }
 0x973   :  { %847 = vmatprep.subr.bf16.mxu1 %v1150_v10 }
 0x976   :  { %848 = vmatpush1.bf16.msra.mxu1 %v1155_v11 }
 0x977   :  { %849 = vmatprep.subr.bf16.mxu1 %v1160_v12 }
 0x97a   :  { %850 = vmatpush1.bf16.msra.mxu1 %v1173_v13 }
 0xa2d   :  { %v695_v0 = vpop.f32.mrf.mxu1 }
 0xa2e   :  { %v702_v26 = vadd.f32 %v695_v0, %v143_v25 }
 0xa2f   :  { %v697_v2 = vpop.f32.mrf.mxu1 }
 0xa30   :  { %v959_v39 = vmul.f32 -1.442695, %v702_v26  ;;  %v703_v10 = vadd.f32 %v697_v2, %v145_v7 }
 0xa31   :  { %v699_v1 = vpop.f32.mrf.mxu1 }
 0xa32   :  { %1053 = vpow2.f32 %v959_v39  ;;  %v960_v41 = vmul.f32 -1.442695, %v703_v10 }
 0xa33   :  { %v700_v5 = vpop.f32.mrf.mxu1  ;;  %1055 = vtanh.f32 %v703_v10 }
 0xa3f   :  { %v1054_v40 = vpop.eup %1053 }
 0xa40   :  { %v710_v11 = vadd.f32 1.0, %v1054_v40  ;;  %v1056_v12 = vpop.eup %1055 }
 0xa42   :  { %1057 = vrcp.f32 %v710_v11 }
 0xa43   :  { %1059 = vpow2.f32 %v960_v41 }
 0xa4f   :  { %v1365_v13 = vpop.eup %1057 }
 0xa50   :  { %v718_v31 = vmul.f32 %v1365_v13, %v1056_v12  ;;  %v1060_v27 = vpop.eup %1059  ;;  %v717_v46 = vmul.f32 %v1365_v13, %v1344_v16 }
 0xa51   :  { %v711_v44 = vadd.f32 1.0, %v1060_v27 }
 0xa52   :  { %720 = vrot.lane.b32.xlu0 %v718_v31, %s1090_s3 }
 0xa53   :  { %1061 = vrcp.f32 %v711_v44 }
 0xa60   :  { %v1062_v49 = vpop.eup %1061 }
 0xac4   :  { %v721_v32 = vpop.permute.xlu0 %720 }
 0xac5   :  { %v1371_v48 = vadd.f32 %v721_v32, %v717_v46  ;;  %v155_v46 = vadd.f32 %v1281_v37, %v1200_v28 }
 0xac7   :  { %1063 = vtanh.f32 %v1371_v48 }
 0xad4   :  { %v1064_v50 = vpop.eup %1063 }
 0xad5   :  { %v725_v51 = vmul.f32 %v1064_v50, %v1062_v49 }
 0xad7   :  { %v741_v53 = vpack.c.bf16 %v725_v51, %v725_v51 }
 0xad9   :  { %743 = vrot.lane.b32.xlu1 %v741_v53, %s1090_s3 }
 0xb4b   :  { %v744_v54 = vpop.permute.xlu1 %743 }
 0xb4c   :  { %963 = vmatmul.mubr.msk.bf16.vlgmr.msra.gmra.mxu0 %vm223_vm2, %v744_v54 }
 0xc0c   :  { %v782_v56 = vpop.f32.mrf.mxu0 }
 0xc0d   :  { %v789_v57 = vadd.f32 %v782_v56, %v149_v55 }
 0xc0e   :  { %v784_v58 = vpop.f32.mrf.mxu0 }
 0xc0f   :  { %v964_v60 = vmul.f32 -1.442695, %v789_v57  ;;  %v790_v29 = vadd.f32 %v784_v58, %v151_v4 }
 0xc10   :  { %v786_v61 = vpop.f32.mrf.mxu0 }
 0xc11   :  { %1065 = vpow2.f32 %v964_v60  ;;  %v965_v30 = vmul.f32 -1.442695, %v790_v29 }
 0xc12   :  { %v787_v3 = vpop.f32.mrf.mxu0  ;;  %1067 = vtanh.f32 %v790_v29 }
 0xc1e   :  { %v1066_v8 = vpop.eup %1065 }
 0xc1f   :  { %v797_v9 = vadd.f32 1.0, %v1066_v8  ;;  %v1068_v14 = vpop.eup %1067 }
 0xc21   :  { %1069 = vrcp.f32 %v797_v9 }
 0xc22   :  { %1071 = vpow2.f32 %v965_v30 }
 0xc2e   :  { %v1380_v15 = vpop.eup %1069 }
 0xc2f   :  { %v805_v33 = vmul.f32 %v1380_v15, %v1068_v14  ;;  %v1072_v19 = vpop.eup %1071  ;;  %v804_v23 = vmul.f32 %v1380_v15, %v1371_v48 }
 0xc30   :  { %v798_v20 = vadd.f32 1.0, %v1072_v19 }
 0xc31   :  { %807 = vrot.lane.b32.xlu0 %v805_v33, %s1090_s3 }
 0xc32   :  { %1073 = vrcp.f32 %v798_v20 }
 0xc3f   :  { %v1074_v25 = vpop.eup %1073 }
 0xca3   :  { %v808_v34 = vpop.permute.xlu0 %807 }
 0xca4   :  { %v1386_v24 = vadd.f32 %v808_v34, %v804_v23 }
 0xca6   :  { %1075 = vtanh.f32 %v1386_v24 }
 0xcb3   :  { %v1076_v0 = vpop.eup %1075 }
 0xcb4   :  { %v812_v26 = vmul.f32 %v1076_v0, %v1074_v25 }
 0xcb6   :  { %v828_v2 = vpack.c.bf16 %v812_v26, %v812_v26 }
 0xcb8   :  { %830 = vrot.lane.b32.xlu1 %v828_v2, %s1090_s3 }
 0xcbc   :  { %293 = vrot.lane.b32.xlu1 %v1211_v45, %s1090_s3 }
 0xcc0   :  { %379 = vrot.lane.b32.xlu1 %v1252_v21, %s1090_s3 }
 0xcc4   :  { %466 = vrot.lane.b32.xlu1 %v1294_v63, %s1090_s3 }
 0xcc8   :  { %553 = vrot.lane.b32.xlu1 %v1320_v47, %s1090_s3 }
 0xccc   :  { %640 = vrot.lane.b32.xlu1 %v1347_v22, %s1090_s3 }
 0xcd0   :  { %727 = vrot.lane.b32.xlu1 %v725_v51, %s1090_s3 }
 0xcd4   :  { %814 = vrot.lane.b32.xlu1 %v812_v26, %s1090_s3 }
 0xd2a   :  { %v831_v39 = vpop.permute.xlu1 %830 }
 0xd2b   :  { %968 = vmatmul.mubr.msk.bf16.vlgmr.msra.gmra.mxu1 %vm223_vm2, %v831_v39 }
 0xd2e   :  { %v294_v45 = vpop.permute.xlu1 %293 }
 0xd2f   :  { %v300_v21 = vsel %vm223_vm2, %v294_v45, %v1208_v42 }
 0xd30   :  { %302 = vst [vmem:[%s1500_s4] sm:$0xff] %v300_v21 }
 0xd32   :  { %v380_v63 = vpop.permute.xlu1 %379 }
 0xd33   :  { %v386_v47 = vsel %vm223_vm2, %v380_v63, %v1249_v17 }
 0xd34   :  { %941 = vst [vmem:[%s1500_s4 + $0x10] sm:$0xff] %v386_v47 }
 0xd36   :  { %v467_v22 = vpop.permute.xlu1 %466 }
 0xd37   :  { %v473_v1 = vsel %vm223_vm2, %v467_v22, %v1291_v59 }
 0xd38   :  { %946 = vst [vmem:[%s1500_s4 + $0x20] sm:$0xff] %v473_v1 }
 0xd3a   :  { %v554_v42 = vpop.permute.xlu1 %553 }
 0xd3b   :  { %v560_v5 = vsel %vm223_vm2, %v554_v42, %v1317_v43 }
 0xd3c   :  { %951 = vst [vmem:[%s1500_s4 + $0x30] sm:$0xff] %v560_v5 }
 0xd3e   :  { %v641_v17 = vpop.permute.xlu1 %640 }
 0xd3f   :  { %v647_v7 = vsel %vm223_vm2, %v641_v17, %v1344_v16  ;;  %v153_v16 = vadd.f32 %v1279_v36, %v1197_v18 }
 0xd40   :  { %956 = vst [vmem:[%s1500_s4 + $0x40] sm:$0xff] %v647_v7 }
 0xd42   :  { %v728_v59 = vpop.permute.xlu1 %727 }
 0xd43   :  { %v734_v10 = vsel %vm223_vm2, %v728_v59, %v1371_v48 }
 0xd44   :  { %961 = vst [vmem:[%s1500_s4 + $0x50] sm:$0xff] %v734_v10 }
 0xd46   :  { %v815_v43 = vpop.permute.xlu1 %814 }
 0xd47   :  { %v821_v40 = vsel %vm223_vm2, %v815_v43, %v1386_v24 }
 0xd48   :  { %966 = vst [vmem:[%s1500_s4 + $0x60] sm:$0xff] %v821_v40 }
 0xdeb   :  { %v869_v11 = vpop.f32.mrf.mxu1 }
 0xdec   :  { %v876_v12 = vadd.f32 %v869_v11, %v153_v16 }
 0xded   :  { %v871_v31 = vpop.f32.mrf.mxu1 }
 0xdee   :  { %v969_v41 = vmul.f32 -1.442695, %v876_v12  ;;  %v877_v32 = vadd.f32 %v871_v31, %v155_v46 }
 0xdef   :  { %v873_v27 = vpop.f32.mrf.mxu1 }
 0xdf0   :  { %1077 = vpow2.f32 %v969_v41  ;;  %v970_v18 = vmul.f32 -1.442695, %v877_v32 }
 0xdf1   :  { %v874_v44 = vpop.f32.mrf.mxu1  ;;  %1079 = vtanh.f32 %v877_v32 }
 0xdfd   :  { %v1078_v48 = vpop.eup %1077 }
 0xdfe   :  { %v884_v49 = vadd.f32 1.0, %v1078_v48  ;;  %v1080_v50 = vpop.eup %1079 }
 0xe00   :  { %1081 = vrcp.f32 %v884_v49 }
 0xe01   :  { %1083 = vpow2.f32 %v970_v18 }
 0xe0d   :  { %v1082_v51 = vpop.eup %1081 }
 0xe0e   :  { %v892_v53 = vmul.f32 %v1082_v51, %v1080_v50  ;;  %v1084_v28 = vpop.eup %1083 }
 0xe10   :  { %894 = vrot.lane.b32.xlu0 %v892_v53, %s1090_s3 }
 0xe14   :  { %297 = vrot.lane.b32.xlu0 %v1203_v35, %s1090_s3  ;;  %v885_v35 = vadd.f32 1.0, %v1084_v28 }
 0xe16   :  { %1085 = vrcp.f32 %v885_v35 }
 0xe18   :  { %383 = vrot.lane.b32.xlu0 %v1228_v62, %s1090_s3  ;;  %v891_v62 = vmul.f32 %v1082_v51, %v1386_v24 }
 0xe1c   :  { %470 = vrot.lane.b32.xlu0 %v1285_v52, %s1090_s3 }
 0xe20   :  { %557 = vrot.lane.b32.xlu0 %v1311_v38, %s1090_s3 }
 0xe23   :  { %v1086_v56 = vpop.eup %1085 }
 0xe24   :  { %644 = vrot.lane.b32.xlu0 %v1338_v6, %s1090_s3 }
 0xe28   :  { %731 = vrot.lane.b32.xlu0 %v1365_v13, %s1090_s3 }
 0xe2c   :  { %818 = vrot.lane.b32.xlu0 %v1380_v15, %s1090_s3 }
 0xe30   :  { %905 = vrot.lane.b32.xlu0 %v1082_v51, %s1090_s3 }
 0xe82   :  { %v895_v36 = vpop.permute.xlu0 %894 }
 0xe83   :  { %v897_v37 = vadd.f32 %v895_v36, %v891_v62 }
 0xe85   :  { %1087 = vtanh.f32 %v897_v37 }
 0xe86   :  { %v298_v52 = vpop.permute.xlu0 %297 }
 0xe87   :  { %v301_v38 = vsel %vm223_vm2, %v298_v52, 0.0 }
 0xe88   :  { %303 = vst [vmem:[%s1500_s4 + $0x8] sm:$0xff] %v301_v38 }
 0xe8a   :  { %v384_v6 = vpop.permute.xlu0 %383 }
 0xe8b   :  { %v387_v13 = vsel %vm223_vm2, %v384_v6, 0.0 }
 0xe8c   :  { %942 = vst [vmem:[%s1500_s4 + $0x18] sm:$0xff] %v387_v13 }
 0xe8e   :  { %v471_v54 = vpop.permute.xlu0 %470 }
 0xe8f   :  { %v474_v55 = vsel %vm223_vm2, %v471_v54, 0.0 }
 0xe90   :  { %947 = vst [vmem:[%s1500_s4 + $0x28] sm:$0xff] %v474_v55 }
 0xe92   :  { %v1088_v57 = vpop.eup %1087  ;;  %v558_v58 = vpop.permute.xlu0 %557 }
 0xe93   :  { %v561_v60 = vsel %vm223_vm2, %v558_v58, 0.0  ;;  %v899_v61 = vmul.f32 %v1088_v57, %v1086_v56 }
 0xe94   :  { %952 = vst [vmem:[%s1500_s4 + $0x38] sm:$0xff] %v561_v60 }
 0xe95   :  { %901 = vrot.lane.b32.xlu1 %v899_v61, %s1090_s3 }
 0xe96   :  { %v645_v3 = vpop.permute.xlu0 %644 }
 0xe97   :  { %v648_v4 = vsel %vm223_vm2, %v645_v3, 0.0 }
 0xe98   :  { %957 = vst [vmem:[%s1500_s4 + $0x48] sm:$0xff] %v648_v4 }
 0xe9a   :  { %v732_v29 = vpop.permute.xlu0 %731 }
 0xe9b   :  { %v735_v8 = vsel %vm223_vm2, %v732_v29, 0.0 }
 0xe9c   :  { %962 = vst [vmem:[%s1500_s4 + $0x58] sm:$0xff] %v735_v8 }
 0xe9e   :  { %v819_v9 = vpop.permute.xlu0 %818 }
 0xe9f   :  { %v822_v14 = vsel %vm223_vm2, %v819_v9, 0.0 }
 0xea0   :  { %967 = vst [vmem:[%s1500_s4 + $0x68] sm:$0xff] %v822_v14 }
 0xea2   :  { %v906_v15 = vpop.permute.xlu0 %905 }
 0xea3   :  { %v909_v33 = vsel %vm223_vm2, %v906_v15, 0.0 }
 0xea4   :  { %972 = vst [vmem:[%s1500_s4 + $0x78] sm:$0xff] %v909_v33 }
 0xf07   :  { %v902_v30 = vpop.permute.xlu1 %901 }
 0xf08   :  { %v908_v19 = vsel %vm223_vm2, %v902_v30, %v897_v37 }
 0xf09   :  { %971 = vst [vmem:[%s1500_s4 + $0x70] sm:$0xff] %v908_v19 }

</bundles_post_ra>
